<compile_context>
chip_gen: v6e
topology: v6e:2x2x1
jax: 0.10.0
libtpu: 0.0.40
codegen_flags: <defaults>
</compile_context>

<pallas_src>
import functools

import jax
import jax.numpy as jnp
from jax.experimental import pallas as pl
from jax.experimental.pallas import tpu as pltpu

HIDDEN = 512
BN_EPS = 1e-5
LANE = 128
TB_MAX = 1024  # per-tile rows; keeps VMEM well under v5e's 16 MiB scoped default


def _round_up(x, m):
    return (x + m - 1) // m * m


def _choose_tile(batch):
    # nt_half tiles per TensorCore; tb multiple of 16 (bf16 sublane packing),
    # capped at TB_MAX. b_pad = 2 * nt_half * tb keeps padding small and the
    # phase-2 grid length >= 2 (both v7x TCs busy).
    nt_half = max(1, -(-batch // (2 * TB_MAX)))
    tb = min(TB_MAX, _round_up(-(-batch // (2 * nt_half)), 16))
    return tb, nt_half


def _resident(a, grid_rank):
    # Whole-array block with a constant index_map -> stays VMEM-resident
    # across grid iterations (weights / biases / stats).
    zero = (0,) * a.ndim
    if grid_rank == 1:
        return pl.BlockSpec(a.shape, lambda i: zero)
    return pl.BlockSpec(a.shape, lambda i, j: zero)


# --------------------------- phase 1: BN statistics ---------------------------

def _stats_kernel(x_ref, c_ref, w1x_ref, w1c_ref, s_ref, s2_ref):
    j = pl.program_id(1)

    @pl.when(j == 0)
    def _():
        s_ref[...] = jnp.zeros_like(s_ref)
        s2_ref[...] = jnp.zeros_like(s2_ref)

    # h0 = [x | c] @ W1  (concat fused as two matmuls; f32 on purpose: it
    # feeds the batch statistics and K is tiny). b1 is deliberately omitted:
    # it shifts the mean but not the variance, and training-mode BN subtracts
    # the mean again, so it cancels exactly; zero-padded rows contribute 0.
    h0 = (jnp.dot(x_ref[...], w1x_ref[...], preferred_element_type=jnp.float32)
          + jnp.dot(c_ref[...], w1c_ref[...], preferred_element_type=jnp.float32))

    s_ref[...] += jnp.sum(h0, axis=0, keepdims=True)[None]
    s2_ref[...] += jnp.sum(h0 * h0, axis=0, keepdims=True)[None]


# --------------------------- phase 2: apply ------------------------------------

def _apply_kernel(x_ref, c_ref, s_ref, s2_ref, w1x_ref, w1c_ref,
                  gamma_ref, beta_ref, w23_ref, b23_ref, out_ref, *, b_real):
    # Fold the two per-core stat partials and build the BN affine. This is
    # (1, 512)-sized work, negligible next to the (TB, 512) passes below.
    inv_n = jnp.float32(1.0 / b_real)
    mean0 = jnp.sum(s_ref[...], axis=0) * inv_n            # E[h0]
    ex2 = jnp.sum(s2_ref[...], axis=0) * inv_n             # E[h0^2]
    var = ex2 - mean0 * mean0                              # Var[h] == Var[h0]
    scale = jax.lax.rsqrt(var + BN_EPS) * gamma_ref[...]
    shift = beta_ref[...] - mean0 * scale                  # b1 cancels exactly

    # Recompute h0 for this batch tile (cheap: K = n_inputs + n_cond) instead
    # of spilling the (B, 512) activation through HBM.
    h0 = (jnp.dot(x_ref[...], w1x_ref[...], preferred_element_type=jnp.float32)
          + jnp.dot(c_ref[...], w1c_ref[...], preferred_element_type=jnp.float32))

    # BatchNorm (training-mode batch stats) + ReLU as a single affine + max.
    h = jnp.maximum(h0 * scale + shift, 0.0)

    # Folded Linear(512->512) @ Linear(512->n_latents): one bf16 MXU matmul
    # with f32 accumulation; output lane-padded to a multiple of 128.
    out = (jnp.dot(h.astype(jnp.bfloat16), w23_ref[...],
                   preferred_element_type=jnp.float32) + b23_ref[...])
    out_ref[...] = out.astype(out_ref.dtype)


# --------------------------- wrapper -------------------------------------------

@functools.partial(jax.jit, static_argnames=("n_latents",))
def encoder_forward(x, c, params, *, n_latents):
    B, n_inputs = x.shape
    n_cond = c.shape[1]

    tb, nt_half = _choose_tile(B)
    b_pad = 2 * nt_half * tb
    nt = 2 * nt_half

    if b_pad != B:
        x = jnp.pad(x, ((0, b_pad - B), (0, 0)))
        c = jnp.pad(c, ((0, b_pad - B), (0, 0)))

    w1x, w1c = params["w1x"], params["w1c"]
    gamma, beta = params["gamma"], params["beta"]
    w23, b23 = params["w23"], params["b23"]
    n_lat_pad = w23.shape[1]

    # ---------------- phase 1: per-core partial sum / sum-of-squares ----------
    x1 = pl.BlockSpec((tb, n_inputs), lambda co, j: (co * nt_half + j, 0))
    c1 = pl.BlockSpec((tb, n_cond), lambda co, j: (co * nt_half + j, 0))
    stat_out = pl.BlockSpec((1, 1, HIDDEN), lambda co, j: (co, 0, 0))

    s, s2 = pl.pallas_call(
        _stats_kernel,
        out_shape=(jax.ShapeDtypeStruct((2, 1, HIDDEN), jnp.float32),
                   jax.ShapeDtypeStruct((2, 1, HIDDEN), jnp.float32)),
        grid=(2, nt_half),
        in_specs=[x1, c1, _resident(w1x, 2), _resident(w1c, 2)],
        out_specs=(stat_out, stat_out),
        compiler_params=pltpu.CompilerParams(
            dimension_semantics=("parallel", "arbitrary")),
    )(x, c, w1x, w1c)

    # ---------------- phase 2: BN -> ReLU -> folded head ----------------------
    x2 = pl.BlockSpec((tb, n_inputs), lambda i: (i, 0))
    c2 = pl.BlockSpec((tb, n_cond), lambda i: (i, 0))
    stat_in = pl.BlockSpec((2, 1, HIDDEN), lambda i: (0, 0, 0))

    out = pl.pallas_call(
        functools.partial(_apply_kernel, b_real=B),
        out_shape=jax.ShapeDtypeStruct((b_pad, n_lat_pad), jnp.bfloat16),
        grid=(nt,),
        in_specs=[x2, c2, stat_in, stat_in,
                  _resident(w1x, 1), _resident(w1c, 1),
                  _resident(gamma, 1), _resident(beta, 1),
                  _resident(w23, 1), _resident(b23, 1)],
        out_specs=pl.BlockSpec((tb, n_lat_pad), lambda i: (i, 0)),
        compiler_params=pltpu.CompilerParams(
            dimension_semantics=("parallel",)),
    )(x, c, s, s2, w1x, w1c, gamma, beta, w23, b23)

    return out[:B, :n_latents].astype(jnp.float32)


# --------------------------- params / reference --------------------------------

def init_params(key, n_inputs, n_latents, n_cond, hidden=HIDDEN):
    # Deterministic synthetic init mimicking PyTorch Linear defaults.
    k1, k2, k3, k4, k5, k6 = jax.random.split(key, 6)
    d_in = n_inputs + n_cond

    def lin(kw, kb, fan_in, fan_out):
        bound = float(fan_in) ** -0.5
        w = jax.random.uniform(kw, (fan_in, fan_out), jnp.float32, -bound, bound)
        b = jax.random.uniform(kb, (1, fan_out), jnp.float32, -bound, bound)
        return w, b

    w1, b1 = lin(k1, k2, d_in, hidden)
    w2, b2 = lin(k3, k4, hidden, hidden)
    w3, b3 = lin(k5, k6, hidden, n_latents)

    n_lat_pad = _round_up(n_latents, LANE)
    w3p = jnp.zeros((hidden, n_lat_pad), jnp.float32).at[:, :n_latents].set(w3)
    b3p = jnp.zeros((1, n_lat_pad), jnp.float32).at[:, :n_latents].set(b3)

    # Fold the two back-to-back Linears (no nonlinearity between them in the
    # module): W23 = W2 @ W3_pad, b23 = b2 @ W3_pad + b3_pad. Composed in f32;
    # only the MXU operand is cast to bf16 (f32 accumulation in-kernel).
    w23 = w2 @ w3p
    b23 = b2 @ w3p + b3p

    return {
        # W1 split for the fused concat; kept f32 (feeds the BN statistics).
        "w1x": w1[:n_inputs], "w1c": w1[n_inputs:], "b1": b1,
        "gamma": jnp.ones((1, hidden), jnp.float32),
        "beta": jnp.zeros((1, hidden), jnp.float32),
        # f32 originals (reference only).
        "w2": w2, "b2": b2, "w3": w3, "b3": b3,
        # folded head used by the kernel.
        "w23": w23.astype(jnp.bfloat16), "b23": b23,
    }


def encoder_ref(x, c, params, n_latents):
    # Pure-JAX f32 reference matching the PyTorch module (training-mode BN).
    w1 = jnp.concatenate([params["w1x"], params["w1c"]], axis=0)
    xc = jnp.concatenate([x, c], axis=1)
    h = xc @ w1 + params["b1"]
    mean = jnp.mean(h, axis=0, keepdims=True)
    var = jnp.mean((h - mean) ** 2, axis=0, keepdims=True)
    h = (h - mean) / jnp.sqrt(var + BN_EPS)
    h = h * params["gamma"] + params["beta"]
    h = jnp.maximum(h, 0.0)
    h = h @ params["w2"] + params["b2"]
    out = h @ params["w3"] + params["b3"]
    return out[:, :n_latents]


if __name__ == "__main__":
    B, n_inputs, n_cond, n_latents = 4, 16, 4, 8

    key = jax.random.PRNGKey(0)
    kx, kc, kp = jax.random.split(key, 3)
    x = jax.random.normal(kx, (B, n_inputs), jnp.float32)
    c = jax.random.normal(kc, (B, n_cond), jnp.float32)
    params = init_params(kp, n_inputs, n_latents, n_cond)

    out = encoder_forward(x, c, params, n_latents=n_latents)
    out = jax.block_until_ready(out)

    ref = encoder_ref(x, c, params, n_latents)
    assert out.shape == (B, n_latents)
    err = float(jnp.max(jnp.abs(out - ref)))
    assert err < 5e-2, f"mismatch vs reference: max abs err = {err}"

    print("KERNEL_OK")
</pallas_src>

<mosaic_0001>
module attributes {stable_mosaic.version = 11 : i64} {
  func.func @_stats_kernel(%arg0: i32, %arg1: i32, %arg2: memref<16x16xf32, #tpu.memory_space<vmem>>, %arg3: memref<16x4xf32, #tpu.memory_space<vmem>>, %arg4: memref<16x512xf32, #tpu.memory_space<vmem>>, %arg5: memref<4x512xf32, #tpu.memory_space<vmem>>, %arg6: memref<1x1x512xf32, #tpu.memory_space<vmem>>, %arg7: memref<1x1x512xf32, #tpu.memory_space<vmem>>) attributes {dimension_semantics = [#tpu.dimension_semantics<parallel>, #tpu.dimension_semantics<arbitrary>], iteration_bounds = array<i64: 2, 1>, scalar_prefetch = 0 : i64, scratch_operands = 0 : i64, tpu.core_type = #tpu.core_type<tc>, window_params = [{transform_indices = @transform_0, window_bounds = array<i64: 16, 16>}, {transform_indices = @transform_1, window_bounds = array<i64: 16, 4>}, {pipeline_mode = #tpu.pipeline_mode<synchronous>, transform_indices = @transform_2, window_bounds = array<i64: 16, 512>}, {pipeline_mode = #tpu.pipeline_mode<synchronous>, transform_indices = @transform_3, window_bounds = array<i64: 4, 512>}, {transform_indices = @transform_4, window_bounds = array<i64: 1, 1, 512>}, {transform_indices = @transform_5, window_bounds = array<i64: 1, 1, 512>}]} {
    %c0_i32 = arith.constant 0 : i32
    %0 = arith.cmpi eq, %arg1, %c0_i32 : i32
    %1 = arith.extui %0 : i1 to i32
    %c0_i32_0 = arith.constant 0 : i32
    %2 = arith.cmpi ne, %1, %c0_i32_0 : i32
    scf.if %2 {
      %cst_23 = arith.constant 0.000000e+00 : f32
      %23 = vector.broadcast %cst_23 : f32 to vector<1x1x512xf32>
      %c0_24 = arith.constant 0 : index
      %c0_25 = arith.constant 0 : index
      %c0_26 = arith.constant 0 : index
      %24 = vector.load %arg6[%c0_24, %c0_25, %c0_26] : memref<1x1x512xf32, #tpu.memory_space<vmem>>, vector<1x1x512xf32>
      tpu.vector_store %arg6[%c0_24, %c0_25, %c0_26], %23 {strides = array<i32>} : memref<1x1x512xf32, #tpu.memory_space<vmem>>, vector<1x1x512xf32>,
      %cst_27 = arith.constant 0.000000e+00 : f32
      %25 = vector.broadcast %cst_27 : f32 to vector<1x1x512xf32>
      %c0_28 = arith.constant 0 : index
      %c0_29 = arith.constant 0 : index
      %c0_30 = arith.constant 0 : index
      %26 = vector.load %arg7[%c0_28, %c0_29, %c0_30] : memref<1x1x512xf32, #tpu.memory_space<vmem>>, vector<1x1x512xf32>
      tpu.vector_store %arg7[%c0_28, %c0_29, %c0_30], %25 {strides = array<i32>} : memref<1x1x512xf32, #tpu.memory_space<vmem>>, vector<1x1x512xf32>,
    } else {
    }
    %c0 = arith.constant 0 : index
    %c0_1 = arith.constant 0 : index
    %3 = vector.load %arg2[%c0, %c0_1] : memref<16x16xf32, #tpu.memory_space<vmem>>, vector<16x16xf32>
    %c0_2 = arith.constant 0 : index
    %c0_3 = arith.constant 0 : index
    %4 = vector.load %arg4[%c0_2, %c0_3] : memref<16x512xf32, #tpu.memory_space<vmem>>, vector<16x512xf32>
    %cst = arith.constant dense<0.000000e+00> : vector<16x512xf32>
    %5 = tpu.matmul %3, %4, %cst {dimension_numbers = #tpu.dot_dimension_numbers<[1], [0], [0], [1], [0, 0, 1, 1], [], []>} : vector<16x16xf32>, vector<16x512xf32>, vector<16x512xf32> -> vector<16x512xf32>
    %c0_4 = arith.constant 0 : index
    %c0_5 = arith.constant 0 : index
    %6 = vector.load %arg3[%c0_4, %c0_5] : memref<16x4xf32, #tpu.memory_space<vmem>>, vector<16x4xf32>
    %c0_6 = arith.constant 0 : index
    %c0_7 = arith.constant 0 : index
    %7 = vector.load %arg5[%c0_6, %c0_7] : memref<4x512xf32, #tpu.memory_space<vmem>>, vector<4x512xf32>
    %cst_8 = arith.constant dense<0.000000e+00> : vector<16x512xf32>
    %8 = tpu.matmul %6, %7, %cst_8 {dimension_numbers = #tpu.dot_dimension_numbers<[1], [0], [0], [1], [0, 0, 1, 1], [], []>} : vector<16x4xf32>, vector<4x512xf32>, vector<16x512xf32> -> vector<16x512xf32>
    %9 = arith.addf %5, %8 : vector<16x512xf32>
    %c0_9 = arith.constant 0 : index
    %c0_10 = arith.constant 0 : index
    %c0_11 = arith.constant 0 : index
    %10 = vector.load %arg6[%c0_9, %c0_10, %c0_11] : memref<1x1x512xf32, #tpu.memory_space<vmem>>, vector<1x1x512xf32>
    %cst_12 = arith.constant dense<0.000000e+00> : vector<512xf32>
    %11 = vector.multi_reduction <add>, %9, %cst_12 [0] : vector<16x512xf32> to vector<512xf32>
    %12 = vector.shape_cast %11 : vector<512xf32> to vector<1x512xf32>
    %13 = vector.shape_cast %12 : vector<1x512xf32> to vector<1x1x512xf32>
    %14 = arith.addf %10, %13 : vector<1x1x512xf32>
    %c0_13 = arith.constant 0 : index
    %c0_14 = arith.constant 0 : index
    %c0_15 = arith.constant 0 : index
    %15 = vector.load %arg6[%c0_13, %c0_14, %c0_15] : memref<1x1x512xf32, #tpu.memory_space<vmem>>, vector<1x1x512xf32>
    tpu.vector_store %arg6[%c0_13, %c0_14, %c0_15], %14 {strides = array<i32>} : memref<1x1x512xf32, #tpu.memory_space<vmem>>, vector<1x1x512xf32>,
    %c0_16 = arith.constant 0 : index
    %c0_17 = arith.constant 0 : index
    %c0_18 = arith.constant 0 : index
    %16 = vector.load %arg7[%c0_16, %c0_17, %c0_18] : memref<1x1x512xf32, #tpu.memory_space<vmem>>, vector<1x1x512xf32>
    %17 = arith.mulf %9, %9 : vector<16x512xf32>
    %cst_19 = arith.constant dense<0.000000e+00> : vector<512xf32>
    %18 = vector.multi_reduction <add>, %17, %cst_19 [0] : vector<16x512xf32> to vector<512xf32>
    %19 = vector.shape_cast %18 : vector<512xf32> to vector<1x512xf32>
    %20 = vector.shape_cast %19 : vector<1x512xf32> to vector<1x1x512xf32>
    %21 = arith.addf %16, %20 : vector<1x1x512xf32>
    %c0_20 = arith.constant 0 : index
    %c0_21 = arith.constant 0 : index
    %c0_22 = arith.constant 0 : index
    %22 = vector.load %arg7[%c0_20, %c0_21, %c0_22] : memref<1x1x512xf32, #tpu.memory_space<vmem>>, vector<1x1x512xf32>
    tpu.vector_store %arg7[%c0_20, %c0_21, %c0_22], %21 {strides = array<i32>} : memref<1x1x512xf32, #tpu.memory_space<vmem>>, vector<1x1x512xf32>,
    return
  }
  func.func @transform_0(%arg0: i32, %arg1: i32) -> (i32, i32) {
    %c1_i32 = arith.constant 1 : i32
    %0 = arith.muli %arg0, %c1_i32 : i32
    %1 = arith.addi %0, %arg1 : i32
    %c0_i32 = arith.constant 0 : i32
    %c0_i32_0 = arith.constant 0 : i32
    return %1, %c0_i32 : i32, i32
  }
  func.func @transform_1(%arg0: i32, %arg1: i32) -> (i32, i32) {
    %c1_i32 = arith.constant 1 : i32
    %0 = arith.muli %arg0, %c1_i32 : i32
    %1 = arith.addi %0, %arg1 : i32
    %c0_i32 = arith.constant 0 : i32
    %c0_i32_0 = arith.constant 0 : i32
    return %1, %c0_i32 : i32, i32
  }
  func.func @transform_2(%arg0: i32, %arg1: i32) -> (i32, i32) {
    %c0_i32 = arith.constant 0 : i32
    %c0_i32_0 = arith.constant 0 : i32
    %c0_i32_1 = arith.constant 0 : i32
    return %c0_i32, %c0_i32_0 : i32, i32
  }
  func.func @transform_3(%arg0: i32, %arg1: i32) -> (i32, i32) {
    %c0_i32 = arith.constant 0 : i32
    %c0_i32_0 = arith.constant 0 : i32
    %c0_i32_1 = arith.constant 0 : i32
    return %c0_i32, %c0_i32_0 : i32, i32
  }
  func.func @transform_4(%arg0: i32, %arg1: i32) -> (i32, i32, i32) {
    %c0_i32 = arith.constant 0 : i32
    %c0_i32_0 = arith.constant 0 : i32
    %c0_i32_1 = arith.constant 0 : i32
    return %arg0, %c0_i32, %c0_i32_0 : i32, i32, i32
  }
  func.func @transform_5(%arg0: i32, %arg1: i32) -> (i32, i32, i32) {
    %c0_i32 = arith.constant 0 : i32
    %c0_i32_0 = arith.constant 0 : i32
    %c0_i32_1 = arith.constant 0 : i32
    return %arg0, %c0_i32, %c0_i32_0 : i32, i32, i32
  }
}

module attributes {stable_mosaic.version = 11 : i64} {
  func.func @_apply_kernel(%arg0: i32, %arg1: memref<16x16xf32, #tpu.memory_space<vmem>>, %arg2: memref<16x4xf32, #tpu.memory_space<vmem>>, %arg3: memref<2x1x512xf32, #tpu.memory_space<vmem>>, %arg4: memref<2x1x512xf32, #tpu.memory_space<vmem>>, %arg5: memref<16x512xf32, #tpu.memory_space<vmem>>, %arg6: memref<4x512xf32, #tpu.memory_space<vmem>>, %arg7: memref<1x512xf32, #tpu.memory_space<vmem>>, %arg8: memref<1x512xf32, #tpu.memory_space<vmem>>, %arg9: memref<512x128xbf16, #tpu.memory_space<vmem>>, %arg10: memref<1x128xf32, #tpu.memory_space<vmem>>, %arg11: memref<16x128xbf16, #tpu.memory_space<vmem>>) attributes {dimension_semantics = [#tpu.dimension_semantics<parallel>], iteration_bounds = array<i64: 2>, scalar_prefetch = 0 : i64, scratch_operands = 0 : i64, tpu.core_type = #tpu.core_type<tc>, window_params = [{transform_indices = @transform_0, window_bounds = array<i64: 16, 16>}, {transform_indices = @transform_1, window_bounds = array<i64: 16, 4>}, {pipeline_mode = #tpu.pipeline_mode<synchronous>, transform_indices = @transform_2, window_bounds = array<i64: 2, 1, 512>}, {pipeline_mode = #tpu.pipeline_mode<synchronous>, transform_indices = @transform_3, window_bounds = array<i64: 2, 1, 512>}, {pipeline_mode = #tpu.pipeline_mode<synchronous>, transform_indices = @transform_4, window_bounds = array<i64: 16, 512>}, {pipeline_mode = #tpu.pipeline_mode<synchronous>, transform_indices = @transform_5, window_bounds = array<i64: 4, 512>}, {pipeline_mode = #tpu.pipeline_mode<synchronous>, transform_indices = @transform_6, window_bounds = array<i64: 1, 512>}, {pipeline_mode = #tpu.pipeline_mode<synchronous>, transform_indices = @transform_7, window_bounds = array<i64: 1, 512>}, {pipeline_mode = #tpu.pipeline_mode<synchronous>, transform_indices = @transform_8, window_bounds = array<i64: 512, 128>}, {pipeline_mode = #tpu.pipeline_mode<synchronous>, transform_indices = @transform_9, window_bounds = array<i64: 1, 128>}, {transform_indices = @transform_10, window_bounds = array<i64: 16, 128>}]} {
    %c0 = arith.constant 0 : index
    %c0_0 = arith.constant 0 : index
    %c0_1 = arith.constant 0 : index
    %0 = vector.load %arg3[%c0, %c0_0, %c0_1] : memref<2x1x512xf32, #tpu.memory_space<vmem>>, vector<2x1x512xf32>
    %cst = arith.constant dense<0.000000e+00> : vector<1x512xf32>
    %1 = vector.multi_reduction <add>, %0, %cst [0] : vector<2x1x512xf32> to vector<1x512xf32>
    %cst_2 = arith.constant 2.500000e-01 : f32
    %2 = vector.broadcast %cst_2 : f32 to vector<1x512xf32>
    %3 = arith.mulf %1, %2 : vector<1x512xf32>
    %c0_3 = arith.constant 0 : index
    %c0_4 = arith.constant 0 : index
    %c0_5 = arith.constant 0 : index
    %4 = vector.load %arg4[%c0_3, %c0_4, %c0_5] : memref<2x1x512xf32, #tpu.memory_space<vmem>>, vector<2x1x512xf32>
    %cst_6 = arith.constant dense<0.000000e+00> : vector<1x512xf32>
    %5 = vector.multi_reduction <add>, %4, %cst_6 [0] : vector<2x1x512xf32> to vector<1x512xf32>
    %cst_7 = arith.constant 2.500000e-01 : f32
    %6 = vector.broadcast %cst_7 : f32 to vector<1x512xf32>
    %7 = arith.mulf %5, %6 : vector<1x512xf32>
    %8 = arith.mulf %3, %3 : vector<1x512xf32>
    %9 = arith.subf %7, %8 : vector<1x512xf32>
    %cst_8 = arith.constant 9.99999974E-6 : f32
    %10 = vector.broadcast %cst_8 : f32 to vector<1x512xf32>
    %11 = arith.addf %9, %10 : vector<1x512xf32>
    %12 = math.rsqrt %11 : vector<1x512xf32>
    %c0_9 = arith.constant 0 : index
    %c0_10 = arith.constant 0 : index
    %13 = vector.load %arg7[%c0_9, %c0_10] : memref<1x512xf32, #tpu.memory_space<vmem>>, vector<1x512xf32>
    %14 = arith.mulf %12, %13 : vector<1x512xf32>
    %c0_11 = arith.constant 0 : index
    %c0_12 = arith.constant 0 : index
    %15 = vector.load %arg8[%c0_11, %c0_12] : memref<1x512xf32, #tpu.memory_space<vmem>>, vector<1x512xf32>
    %16 = arith.mulf %3, %14 : vector<1x512xf32>
    %17 = arith.subf %15, %16 : vector<1x512xf32>
    %c0_13 = arith.constant 0 : index
    %c0_14 = arith.constant 0 : index
    %18 = vector.load %arg1[%c0_13, %c0_14] : memref<16x16xf32, #tpu.memory_space<vmem>>, vector<16x16xf32>
    %c0_15 = arith.constant 0 : index
    %c0_16 = arith.constant 0 : index
    %19 = vector.load %arg5[%c0_15, %c0_16] : memref<16x512xf32, #tpu.memory_space<vmem>>, vector<16x512xf32>
    %cst_17 = arith.constant dense<0.000000e+00> : vector<16x512xf32>
    %20 = tpu.matmul %18, %19, %cst_17 {dimension_numbers = #tpu.dot_dimension_numbers<[1], [0], [0], [1], [0, 0, 1, 1], [], []>} : vector<16x16xf32>, vector<16x512xf32>, vector<16x512xf32> -> vector<16x512xf32>
    %c0_18 = arith.constant 0 : index
    %c0_19 = arith.constant 0 : index
    %21 = vector.load %arg2[%c0_18, %c0_19] : memref<16x4xf32, #tpu.memory_space<vmem>>, vector<16x4xf32>
    %c0_20 = arith.constant 0 : index
    %c0_21 = arith.constant 0 : index
    %22 = vector.load %arg6[%c0_20, %c0_21] : memref<4x512xf32, #tpu.memory_space<vmem>>, vector<4x512xf32>
    %cst_22 = arith.constant dense<0.000000e+00> : vector<16x512xf32>
    %23 = tpu.matmul %21, %22, %cst_22 {dimension_numbers = #tpu.dot_dimension_numbers<[1], [0], [0], [1], [0, 0, 1, 1], [], []>} : vector<16x4xf32>, vector<4x512xf32>, vector<16x512xf32> -> vector<16x512xf32>
    %24 = arith.addf %20, %23 : vector<16x512xf32>
    %25 = vector.broadcast %14 : vector<1x512xf32> to vector<16x512xf32>
    %26 = arith.mulf %24, %25 : vector<16x512xf32>
    %27 = vector.broadcast %17 : vector<1x512xf32> to vector<16x512xf32>
    %28 = arith.addf %26, %27 : vector<16x512xf32>
    %cst_23 = arith.constant 0.000000e+00 : f32
    %29 = vector.broadcast %cst_23 : f32 to vector<16x512xf32>
    %30 = arith.maximumf %28, %29 : vector<16x512xf32>
    %31 = arith.truncf %30 : vector<16x512xf32> to vector<16x512xbf16>
    %c0_24 = arith.constant 0 : index
    %c0_25 = arith.constant 0 : index
    %32 = vector.load %arg9[%c0_24, %c0_25] : memref<512x128xbf16, #tpu.memory_space<vmem>>, vector<512x128xbf16>
    %cst_26 = arith.constant dense<0.000000e+00> : vector<16x128xf32>
    %33 = tpu.matmul %31, %32, %cst_26 {dimension_numbers = #tpu.dot_dimension_numbers<[1], [0], [0], [1], [0, 0, 1, 1], [], []>} : vector<16x512xbf16>, vector<512x128xbf16>, vector<16x128xf32> -> vector<16x128xf32>
    %c0_27 = arith.constant 0 : index
    %c0_28 = arith.constant 0 : index
    %34 = vector.load %arg10[%c0_27, %c0_28] : memref<1x128xf32, #tpu.memory_space<vmem>>, vector<1x128xf32>
    %35 = vector.broadcast %34 : vector<1x128xf32> to vector<16x128xf32>
    %36 = arith.addf %33, %35 : vector<16x128xf32>
    %37 = arith.truncf %36 : vector<16x128xf32> to vector<16x128xbf16>
    %c0_29 = arith.constant 0 : index
    %c0_30 = arith.constant 0 : index
    %38 = vector.load %arg11[%c0_29, %c0_30] : memref<16x128xbf16, #tpu.memory_space<vmem>>, vector<16x128xbf16>
    tpu.vector_store %arg11[%c0_29, %c0_30], %37 {strides = array<i32>} : memref<16x128xbf16, #tpu.memory_space<vmem>>, vector<16x128xbf16>,
    return
  }
  func.func @transform_0(%arg0: i32) -> (i32, i32) {
    %c0_i32 = arith.constant 0 : i32
    %c0_i32_0 = arith.constant 0 : i32
    return %arg0, %c0_i32 : i32, i32
  }
  func.func @transform_1(%arg0: i32) -> (i32, i32) {
    %c0_i32 = arith.constant 0 : i32
    %c0_i32_0 = arith.constant 0 : i32
    return %arg0, %c0_i32 : i32, i32
  }
  func.func @transform_2(%arg0: i32) -> (i32, i32, i32) {
    %c0_i32 = arith.constant 0 : i32
    %c0_i32_0 = arith.constant 0 : i32
    %c0_i32_1 = arith.constant 0 : i32
    %c0_i32_2 = arith.constant 0 : i32
    return %c0_i32, %c0_i32_0, %c0_i32_1 : i32, i32, i32
  }
  func.func @transform_3(%arg0: i32) -> (i32, i32, i32) {
    %c0_i32 = arith.constant 0 : i32
    %c0_i32_0 = arith.constant 0 : i32
    %c0_i32_1 = arith.constant 0 : i32
    %c0_i32_2 = arith.constant 0 : i32
    return %c0_i32, %c0_i32_0, %c0_i32_1 : i32, i32, i32
  }
  func.func @transform_4(%arg0: i32) -> (i32, i32) {
    %c0_i32 = arith.constant 0 : i32
    %c0_i32_0 = arith.constant 0 : i32
    %c0_i32_1 = arith.constant 0 : i32
    return %c0_i32, %c0_i32_0 : i32, i32
  }
  func.func @transform_5(%arg0: i32) -> (i32, i32) {
    %c0_i32 = arith.constant 0 : i32
    %c0_i32_0 = arith.constant 0 : i32
    %c0_i32_1 = arith.constant 0 : i32
    return %c0_i32, %c0_i32_0 : i32, i32
  }
  func.func @transform_6(%arg0: i32) -> (i32, i32) {
    %c0_i32 = arith.constant 0 : i32
    %c0_i32_0 = arith.constant 0 : i32
    %c0_i32_1 = arith.constant 0 : i32
    return %c0_i32, %c0_i32_0 : i32, i32
  }
  func.func @transform_7(%arg0: i32) -> (i32, i32) {
    %c0_i32 = arith.constant 0 : i32
    %c0_i32_0 = arith.constant 0 : i32
    %c0_i32_1 = arith.constant 0 : i32
    return %c0_i32, %c0_i32_0 : i32, i32
  }
  func.func @transform_8(%arg0: i32) -> (i32, i32) {
    %c0_i32 = arith.constant 0 : i32
    %c0_i32_0 = arith.constant 0 : i32
    %c0_i32_1 = arith.constant 0 : i32
    return %c0_i32, %c0_i32_0 : i32, i32
  }
  func.func @transform_9(%arg0: i32) -> (i32, i32) {
    %c0_i32 = arith.constant 0 : i32
    %c0_i32_0 = arith.constant 0 : i32
    %c0_i32_1 = arith.constant 0 : i32
    return %c0_i32, %c0_i32_0 : i32, i32
  }
  func.func @transform_10(%arg0: i32) -> (i32, i32) {
    %c0_i32 = arith.constant 0 : i32
    %c0_i32_0 = arith.constant 0 : i32
    return %arg0, %c0_i32 : i32, i32
  }
}

</mosaic_0001>

<bundles_post_ra>
// kernel: encoder_forward.2
= control target key start
LH: loop header
LB: loop body
LE: loop exit
PB: predicated region body
PF: predicated region fallthrough
CT: control target
= control target key end

     0   :  { %s988_s18 = smov 0   ;;  %s990_s19 = smov 0   ;;  %s1091_s0 = inlined_call_operand.vmem [shape: f32[32,16], index: 0, kind: input, shape index: {}]   ;;  %s1092_s1 = inlined_call_operand.vmem [shape: f32[32,4], index: 1, kind: input, shape index: {}]   ;;  %s1093_s2 = inlined_call_operand.vmem [shape: f32[16,512], index: 2, kind: input, shape index: {}]   ;;  %s1094_s3 = inlined_call_operand.vmem [shape: f32[4,512], index: 3, kind: input, shape index: {}]   ;;  %s1095_s4 = inlined_call_operand.vmem [shape: f32[2,1,512], index: 4, kind: output, shape index: {0}]   ;;  %s1096_s5 = inlined_call_operand.vmem [shape: f32[2,1,512], index: 5, kind: output, shape index: {1}]  }
   0x1   :  { %s992_s20 = smov 0  }
   0x2 LB: > { %s28_s21 = sadd.s32 1, %s950_s19  ;;  %p883_p0 = scmp.ge.s32.totalorder %s954_s20, 1  ;;  %s954_s20 = sphi %s992_s20, %s16_s20   ;;  %s950_s19 = sphi %s990_s19, %s1100_s19   ;;  %s946_s18 = sphi %s988_s18, %s1099_s18  }
   0x3   : > { %p30_p1 = scmp.ge.s32.totalorder %s28_s21, 2  ;;  %p222_p2 = scmp.lt.s32.totalorder %s954_s20, 3 }
   0x5   : > { %s1102_s21 = smov (%p30_p1, %s28_s21), 0  ;;  %p223_p3 = pnand %p883_p0, %p222_p2 }
   0x6   : > { %s884_s26 = sshll.u32 (!%p223_p3), %s946_s18, 1  ;;  %p276_p5 = scmp.lt.s32.totalorder (!%p223_p3), %s946_s18, 1 }
   0x7   : > { %226 = sbr.rel (%p223_p3) target bundleno = 255 (0xff), region = 36  ;;  %p262_p4 = scmp.lt.s32.totalorder (!%p223_p3), %s884_s26, 3 }
   0xc   : > { %v306_v0 = vld [vmem:[%s1094_s3] sm:$0xff]  ;;  %vm319_vm0 = vcmask 1043456   ;;  %v307_v1 = vld [vmem:[%s1094_s3 + $0x8] sm:$0xff]  ;;  %v956_v4 = vmov 0.0   ;;  %v303_v6 = vld [vmem:[%s1093_s2 + $0x38] sm:$0xff]  ;;  %s1104_s26 = smov (!%p262_p4, %s884_s26), 3  ;;  %v288_v17 = vlaneseq }
   0xd   : > { %v310_v2 = vcombine.high %v306_v0, %v306_v0  ;;  %v311_v3 = vcombine.high %v307_v1, %v307_v1  ;;  %392 = vmatprep.mubr.f32.mxu0 %v956_v4  ;;  %469 = vmatprep.mubr.f32.mxu1 %v956_v4  ;;  %v301_v5 = vld [vmem:[%s1093_s2 + $0x28] sm:$0xff]  ;;  %s885_s6 = sshll.u32 %s1104_s26, 3  ;;  %vm312_vm1 = vcmask 31744   ;;  %v300_v7 = vld [vmem:[%s1093_s2 + $0x20] sm:$0xff]  ;;  %v302_v8 = vld [vmem:[%s1093_s2 + $0x30] sm:$0xff]  ;;  %vm482_vm2 = vcmask 130048  }
   0xe   : > { %s273_s9 = scalar_lea.vmem %s1092_s1, %s885_s6  ;;  %v297_v10 = vld [vmem:[%s1093_s2 + $0x8] sm:$0xff]  ;;  %v299_v11 = vld [vmem:[%s1093_s2 + $0x18] sm:$0xff]  ;;  %s265_s24 = scalar_lea.vmem %s1091_s0, %s885_s6  ;;  %v296_v13 = vld [vmem:[%s1093_s2] sm:$0xff]  ;;  %vm1056_vm3 = vcmp.lt.s32.totalorder %v288_v17, 512  ;;  %v957_v33 = vmov 1966171168  }
   0xf   : > { %890 = vmatprep.subr.msk.mxu0 %vm319_vm0, %v310_v2  ;;  %894 = vmatprep.subr.msk.mxu1 %vm319_vm0, %v311_v3  ;;  %v304_v9 = vld [vmem:[%s273_s9] sm:$0xff]  ;;  %v305_v12 = vld [vmem:[%s273_s9 + $0x8] sm:$0xff]  ;;  %v298_v14 = vld [vmem:[%s1093_s2 + $0x10] sm:$0xff]  ;;  %s1106_s18 = smov (!%p276_p5, %s946_s18), 1  ;;  %v1071_v34 = vunpack.c.l.s4 %v957_v33  ;;  %v682_v45 = vshrl.u32 %v288_v17, 7 }
  0x10   : > { %891 = vmatpush1.msk.msra.mxu0 %vm319_vm0, %v306_v0  ;;  %895 = vmatpush1.msk.msra.mxu1 %vm319_vm0, %v307_v1  ;;  %v294_v15 = vld [vmem:[%s265_s24] sm:$0xff]  ;;  %v295_v16 = vld [vmem:[%s265_s24 + $0x8] sm:$0xff]  ;;  %s888_s29 = sshll.u32 %s1106_s18, 2 }
  0x11   : > { %517 = vmatprep.subr.mxu0 %v301_v5  ;;  %594 = vmatprep.subr.mxu1 %v303_v6  ;;  %s1054_s7 = scalar_lea.vmem %s1095_s4, %s888_s29  ;;  %s1066_s10 = scalar_lea.vmem %s1096_s5, %s888_s29  ;;  %v680_v44 = vunpack.c.0.s8 %v1071_v34 }
  0x12   : > { %892 = vmatmul.mubr.msk.f32.vlgmr.msra.gmra.mxu0 %vm312_vm1, %v304_v9  ;;  %896 = vmatmul.mubr.msk.f32.vlgmr.msra.gmra.mxu1 %vm312_vm1, %v304_v9  ;;  %292 = vst.msk [vmem:[%s1054_s7] sm:$0xf] %vm1056_vm3, %v956_v4  ;;  %293 = vst.msk [vmem:[%s1066_s10] sm:$0xf] %vm1056_vm3, %v956_v4 }
  0x13   : > { %518 = vmatpush1.msra.mxu0 %v300_v7  ;;  %595 = vmatpush1.msra.mxu1 %v302_v8 }
  0x14   : > { %398 = vmatprep.mubr.f32.mxu0 %v956_v4  ;;  %475 = vmatprep.mubr.f32.mxu1 %v956_v4 }
  0x15   : > { %519 = vmatprep.subr.mxu0 %v297_v10  ;;  %596 = vmatprep.subr.mxu1 %v299_v11 }
  0x16   : > { %893 = vmatmul.mubr.msk.f32.gmra.mxu0 %vm312_vm1, %v305_v12  ;;  %897 = vmatmul.mubr.msk.f32.gmra.mxu1 %vm312_vm1, %v305_v12 }
  0x17   : > { %520 = vmatpush1.msra.mxu0 %v296_v13  ;;  %597 = vmatpush1.msra.mxu1 %v298_v14 }
  0x18   : > { %553 = vmatprep.mubr.f32.mxu0 %v956_v4  ;;  %630 = vmatprep.mubr.f32.mxu1 %v956_v4 }
  0x1a   : > { %898 = vmatmul.mubr.msk.f32.vlgmr.msra.gmra.mxu0 %vm482_vm2, %v294_v15  ;;  %900 = vmatmul.mubr.msk.f32.vlgmr.msra.gmra.mxu1 %vm482_vm2, %v294_v15 }
  0x1b   : > { %559 = vmatprep.mubr.f32.mxu0 %v956_v4  ;;  %636 = vmatprep.mubr.f32.mxu1 %v956_v4 }
  0x1e   : > { %899 = vmatmul.mubr.msk.f32.gmra.mxu0 %vm482_vm2, %v295_v16  ;;  %901 = vmatmul.mubr.msk.f32.gmra.mxu1 %vm482_vm2, %v295_v16 }
  0xd2   : > { %v394_v19 = vpop.f32.mrf.mxu0  ;;  %v471_v20 = vpop.f32.mrf.mxu1 }
  0xd4   : > { %v396_v21 = vpop.f32.mrf.mxu0  ;;  %v473_v22 = vpop.f32.mrf.mxu1 }
  0xd6   : > { %v400_v23 = vpop.f32.mrf.mxu0  ;;  %v477_v24 = vpop.f32.mrf.mxu1 }
  0xd8   : > { %v402_v25 = vpop.f32.mrf.mxu0  ;;  %v479_v26 = vpop.f32.mrf.mxu1 }
  0xda   : > { %v555_v27 = vpop.f32.mrf.mxu0  ;;  %v632_v28 = vpop.f32.mrf.mxu1 }
  0xdb   : > { %v556_v29 = vadd.f32 %v555_v27, %v394_v19  ;;  %v633_v30 = vadd.f32 %v632_v28, %v471_v20 }
  0xdc   : > { %v557_v31 = vpop.f32.mrf.mxu0  ;;  %v634_v32 = vpop.f32.mrf.mxu1 }
  0xdd   : > { %v558_v35 = vadd.f32 %v557_v31, %v396_v21  ;;  %v635_v36 = vadd.f32 %v634_v32, %v473_v22  ;;  %v708_v41 = vmul.f32 %v556_v29, %v556_v29  ;;  %v710_v42 = vmul.f32 %v633_v30, %v633_v30 }
  0xde   : > { %v561_v37 = vpop.f32.mrf.mxu0  ;;  %v638_v38 = vpop.f32.mrf.mxu1 }
  0xdf   : > { %v562_v39 = vadd.f32 %v561_v37, %v400_v23  ;;  %v639_v40 = vadd.f32 %v638_v38, %v477_v24  ;;  %v709_v51 = vmul.f32 %v558_v35, %v558_v35  ;;  %v711_v52 = vmul.f32 %v635_v36, %v635_v36 }
  0xe0   : > { %v563_v43 = vpop.f32.mrf.mxu0  ;;  %v640_v46 = vpop.f32.mrf.mxu1 }
  0xe1   : > { %v644_v47 = vadd.f32 %v562_v39, %v556_v29  ;;  %v712_v48 = vmul.f32 %v562_v39, %v562_v39  ;;  %v658_v49 = vadd.f32 %v639_v40, %v633_v30  ;;  %v714_v50 = vmul.f32 %v639_v40, %v639_v40 }
  0xe2   : > { %v564_v53 = vadd.f32 %v563_v43, %v402_v25  ;;  %v641_v54 = vadd.f32 %v640_v46, %v479_v26  ;;  %v683_v40 = vsub.s32 %v680_v44, %v682_v45 }
  0xe3   : > { %v645_v55 = vrot.slane %v644_v47, 4  ;;  %v716_v56 = vadd.f32 %v712_v48, %v708_v41  ;;  %v659_v57 = vrot.slane %v658_v49, 4  ;;  %v730_v58 = vadd.f32 %v714_v50, %v710_v42 }
  0xe4   : > { %v651_v59 = vadd.f32 %v564_v53, %v558_v35  ;;  %v713_v60 = vmul.f32 %v564_v53, %v564_v53  ;;  %v665_v61 = vadd.f32 %v641_v54, %v635_v36  ;;  %v715_v62 = vmul.f32 %v641_v54, %v641_v54 }
  0xe5   : > { %v646_v63 = vadd.f32 %v645_v55, %v644_v47  ;;  %v717_v0 = vrot.slane %v716_v56, 4  ;;  %v660_v1 = vadd.f32 %v659_v57, %v658_v49  ;;  %v731_v2 = vrot.slane %v730_v58, 4 }
  0xe6   : > { %v652_v3 = vrot.slane %v651_v59, 4  ;;  %v723_v4 = vadd.f32 %v713_v60, %v709_v51  ;;  %v666_v5 = vrot.slane %v665_v61, 4  ;;  %v737_v6 = vadd.f32 %v715_v62, %v711_v52 }
  0xe7   : > { %v647_v7 = vrot.slane %v646_v63, 2  ;;  %v718_v8 = vadd.f32 %v717_v0, %v716_v56  ;;  %v661_v9 = vrot.slane %v660_v1, 2  ;;  %v732_v10 = vadd.f32 %v731_v2, %v730_v58  ;;  %v643_v58 = vld [vmem:[%s1054_s7] sm:$0xf] }
  0xe8   : > { %v653_v11 = vadd.f32 %v652_v3, %v651_v59  ;;  %v724_v12 = vrot.slane %v723_v4, 4  ;;  %v667_v13 = vadd.f32 %v666_v5, %v665_v61  ;;  %v738_v14 = vrot.slane %v737_v6, 4  ;;  %v707_v61 = vld [vmem:[%s1066_s10] sm:$0xf] }
  0xe9   : > { %v648_v15 = vadd.f32 %v647_v7, %v646_v63  ;;  %v719_v16 = vrot.slane %v718_v8, 2  ;;  %v662_v17 = vadd.f32 %v661_v9, %v660_v1  ;;  %v733_v19 = vrot.slane %v732_v10, 2 }
  0xea   : > { %v654_v20 = vrot.slane %v653_v11, 2  ;;  %v725_v21 = vadd.f32 %v724_v12, %v723_v4  ;;  %v668_v22 = vrot.slane %v667_v13, 2  ;;  %v739_v23 = vadd.f32 %v738_v14, %v737_v6 }
  0xeb   : > { %v649_v24 = vrot.slane %v648_v15, 1  ;;  %v720_v25 = vadd.f32 %v719_v16, %v718_v8  ;;  %v663_v26 = vrot.slane %v662_v17, 1  ;;  %v734_v27 = vadd.f32 %v733_v19, %v732_v10 }
  0xec   : > { %v655_v28 = vadd.f32 %v654_v20, %v653_v11  ;;  %v726_v29 = vrot.slane %v725_v21, 2  ;;  %v669_v30 = vadd.f32 %v668_v22, %v667_v13  ;;  %v740_v31 = vrot.slane %v739_v23, 2 }
  0xed   : > { %v721_v32 = vrot.slane %v720_v25, 1  ;;  %v735_v33 = vrot.slane %v734_v27, 1  ;;  %v650_v38 = vadd.f32 %v649_v24, %v648_v15  ;;  %v664_v39 = vadd.f32 %v663_v26, %v662_v17 }
  0xee   : > { %v656_v34 = vrot.slane %v655_v28, 1  ;;  %v727_v35 = vadd.f32 %v726_v29, %v725_v21  ;;  %v670_v36 = vrot.slane %v669_v30, 1  ;;  %v741_v37 = vadd.f32 %v740_v31, %v739_v23 }
  0xef   : > { %v722_v47 = vadd.f32 %v721_v32, %v720_v25  ;;  %v736_v48 = vadd.f32 %v735_v33, %v734_v27 }
  0xf0   : > { %v657_v41 = vadd.f32 %v656_v34, %v655_v28  ;;  %v728_v42 = vrot.slane %v727_v35, 1  ;;  %v671_v43 = vadd.f32 %v670_v36, %v669_v30  ;;  %v742_v46 = vrot.slane %v741_v37, 1 }
  0xf2   : > { %v676_v49 = vcombine.low %v650_v38, %v657_v41  ;;  %v729_v50 = vadd.f32 %v728_v42, %v727_v35  ;;  %v677_v51 = vcombine.low %v664_v39, %v671_v43  ;;  %v743_v52 = vadd.f32 %v742_v46, %v741_v37 }
  0xf4   : > { %v684_v53 = vrot.slane %v676_v49, %v683_v40  ;;  %v748_v54 = vcombine.low %v722_v47, %v729_v50  ;;  %v691_v55 = vrot.slane %v677_v51, %v683_v40  ;;  %v749_v56 = vcombine.low %v736_v48, %v743_v52 }
  0xf6   : > { %v756_v57 = vrot.slane %v748_v54, %v683_v40  ;;  %v692_v44 = vcombine.low %v684_v53, %v691_v55  ;;  %v763_v45 = vrot.slane %v749_v56, %v683_v40 }
  0xf8   : > { %v699_v59 = vrot.slane %v692_v44, %v683_v40  ;;  %v764_v60 = vcombine.low %v756_v57, %v763_v45 }
  0xfa   : > { %v701_v62 = vadd.f32 %v699_v59, %v643_v58  ;;  %v771_v63 = vrot.slane %v764_v60, %v683_v40 }
  0xfc   : > { %706 = vst.msk [vmem:[%s1054_s7] sm:$0xf] %vm1056_vm3, %v701_v62  ;;  %v773_v0 = vadd.f32 %v771_v63, %v707_v61 }
  0xfe   : > { %774 = vst.msk [vmem:[%s1066_s10] sm:$0xf] %vm1056_vm3, %v773_v0 }
  0xff PF: > { %s16_s20 = sadd.s32 1, %s954_s20   ;;  %s1099_s18 = smov %s950_s19 }
 0x100   : > { %p13_p6 = scmp.ge.s32.totalorder %s16_s20, 4   ;;  %s1100_s19 = smov %s1102_s21 }
 0x102   :  { %15 = sbr.rel (!%p13_p6) target bundleno = 2 (0x2), region = 85 }

// kernel: encoder_forward.3
= control target key start
LH: loop header
LB: loop body
LE: loop exit
PB: predicated region body
PF: predicated region fallthrough
CT: control target
= control target key end

     0   :  { %15 = vsyncpa [#allocation3], 0  ;;  %s1724_s13 = smov 0   ;;  %s1887_s0 = inlined_call_operand.vmem [shape: f32[32,16], index: 0, kind: input, shape index: {}]   ;;  %s1888_s1 = inlined_call_operand.vmem [shape: f32[32,4], index: 1, kind: input, shape index: {}]   ;;  %s1889_s2 = inlined_call_operand.vmem [shape: f32[2,1,512], index: 2, kind: input, shape index: {}]   ;;  %s1890_s3 = inlined_call_operand.vmem [shape: f32[2,1,512], index: 3, kind: input, shape index: {}]   ;;  %s1891_s4 = inlined_call_operand.vmem [shape: f32[16,512], index: 4, kind: input, shape index: {}]   ;;  %s1892_s5 = inlined_call_operand.vmem [shape: f32[4,512], index: 5, kind: input, shape index: {}]   ;;  %s1893_s6 = inlined_call_operand.vmem [shape: f32[1,512], index: 6, kind: input, shape index: {}]   ;;  %s1894_s7 = inlined_call_operand.vmem [shape: f32[1,512], index: 7, kind: input, shape index: {}]   ;;  %s1895_s8 = inlined_call_operand.hbm [shape: bf16[512,128], index: 8, kind: input, shape index: {}]   ;;  %s1896_s9 = inlined_call_operand.vmem [shape: f32[1,128], index: 9, kind: input, shape index: {}]   ;;  %s1897_s10 = inlined_call_operand.vmem [shape: bf16[32,128], index: 10, kind: output, shape index: {}]  }
   0x1 LB: > { %s1448_s14 = sadd.s32 4294967295, %s1662_s13   ;;  %p1450_p0 = scmp.ge.s32.totalorder %s1662_s13, 1  ;;  %s1662_s13 = sphi %s1724_s13, %s21_s13  }
   0x2   : > { %p272_p1 = scmp.lt.s32.totalorder %s1662_s13, 3  ;;  %s1664_s15 = smov [#allocation2]  }
   0x3   : > { %s302_s16 = sshll.u32 %s1664_s15, 4  ;;  %p1736_p3 = scmp.eq.s32.totalorder %s1448_s14, 0  ;;  %s303_s16 = int_to_ptr.vmem [resolvable:$true] %s302_s16 }
   0x4   : > { %p1732_p2 = pnand %p1450_p0, %p272_p1  ;;  %s1637_s19 = scalar_lea.vmem %s303_s16, 4096 }
   0x5   : > { %p1638_p7 = scmp.ne.s32.totalorder %s303_s16, %s1637_s19  ;;  %p1645_p10 = scmp.lt.s32.totalorder %s303_s16, %s303_s16 }
   0x6   : > { %p1565_p4 = pneg %p1732_p2  ;;  %p1646_p11 = scmp.lt.s32.totalorder %s1637_s19, %s1637_s19 }
   0x8   : > { %p1566_p5 = pnand %p1736_p3, %p1565_p4  ;;  %p1647_p12 = por %p1646_p11, %p1645_p10 }
   0xa   : > { %p1628_p6 = pneg %p1566_p5 }
   0xc   : > { %p1640_p8 = pnand %p1638_p7, %p1628_p6 }
   0xe   : > { %p1641_p9 = pneg %p1640_p8 }
  0x10   : > { %p1648_p13 = pnand %p1647_p12, %p1641_p9 }
  0x12   : > { %1651 = shalt.err (!%p1648_p13)
}
  0x13   : > { %s1665_s20 = smov 64   ;;  %s1666_s21 = smov 4  }
  0x14   : > { %1568 = dma.hbm_to_vmem [thread:$0]  (!%p1566_p5), %s1895_s8, 4096, %s303_s16, [#allocation3], %s1665_s20, %s1665_s20, %s1666_s21  }
  0x15   : > { %339 = sbr.rel (%p1732_p2) target bundleno = 460 (0x1cc), region = 60 }
  0x1a   : > { %1657 = dma.done.wait (%p1736_p3), [#allocation3], 4096  }
  0x1b   : > { %1659 = vsyncadd (%p1736_p3), [#allocation3], 4294963200  ;;  %s1455_s24 = sshll.u32 %s1448_s14, 1  ;;  %v1667_v0 = vmov 0.0   ;;  %v611_v1 = vld [vmem:[%s1892_s5] sm:$0xff]  ;;  %vm624_vm0 = vcmask 1043456   ;;  %v405_v49 = vlaneseq }
  0x1c   : > { %697 = vmatprep.mubr.f32.mxu0 %v1667_v0  ;;  %774 = vmatprep.mubr.f32.mxu1 %v1667_v0  ;;  %p383_p0 = scmp.lt.s32.totalorder %s1455_s24, 3  ;;  %v612_v2 = vld [vmem:[%s1892_s5 + $0x8] sm:$0xff]  ;;  %v615_v3 = vcombine.high %v611_v1, %v611_v1  ;;  %vm617_vm1 = vcmask 31744   ;;  %v605_v7 = vld [vmem:[%s1891_s4 + $0x20] sm:$0xff]  ;;  %v608_v8 = vld [vmem:[%s1891_s4 + $0x38] sm:$0xff]  ;;  %vm787_vm2 = vcmask 130048  }
  0x1d   : > { %v616_v4 = vcombine.high %v612_v2, %v612_v2  ;;  %v606_v6 = vld [vmem:[%s1891_s4 + $0x28] sm:$0xff]  ;;  %v607_v9 = vld [vmem:[%s1891_s4 + $0x30] sm:$0xff]  ;;  %v601_v12 = vld [vmem:[%s1891_s4] sm:$0xff]  ;;  %v1800_v50 = vshrl.u32 %v405_v49, 7  ;;  %vm445_vm3 = vcmask 1040384  }
  0x1e   : > { %s1901_s24 = smov (!%p383_p0, %s1455_s24), 3  ;;  %1461 = vmatprep.subr.msk.mxu0 %vm624_vm0, %v615_v3  ;;  %v602_v11 = vld [vmem:[%s1891_s4 + $0x8] sm:$0xff]  ;;  %v604_v13 = vld [vmem:[%s1891_s4 + $0x18] sm:$0xff]  ;;  %v603_v15 = vld [vmem:[%s1891_s4 + $0x10] sm:$0xff] }
  0x1f   : > { %s1456_s25 = sshll.u32 %s1901_s24, 3  ;;  %1465 = vmatprep.subr.msk.mxu1 %vm624_vm0, %v616_v4  ;;  %1462 = vmatpush1.msk.msra.mxu0 %vm624_vm0, %v611_v1  ;;  %v1586_v16 = vld [vmem:[#allocation2 + $0x78] sm:$0xff]   ;;  %v1590_v21 = vld [vmem:[#allocation2 + $0x70] sm:$0xff]   ;;  %v1594_v25 = vld [vmem:[#allocation2 + $0x68] sm:$0xff]   ;;  %v1803_v51 = vsub.s32 0, %v1800_v50  ;;  %v1812_v54 = vsub.s32 1, %v1800_v50 }
  0x20   : > { %s392_s28 = scalar_lea.vmem %s1888_s1, %s1456_s25  ;;  %1466 = vmatpush1.msk.msra.mxu1 %vm624_vm0, %v612_v2  ;;  %s386_s26 = scalar_lea.vmem %s1887_s0, %s1456_s25  ;;  %822 = vmatprep.subr.mxu0 %v606_v6  ;;  %v1587_v17 = vld [vmem:[#allocation2 + $0xf8] sm:$0xff]   ;;  %v1591_v22 = vld [vmem:[#allocation2 + $0xf0] sm:$0xff]   ;;  %v1595_v26 = vld [vmem:[#allocation2 + $0xe8] sm:$0xff]   ;;  %v1815_v55 = vsub.s32 2, %v1800_v50  ;;  %v1819_v57 = vsub.s32 3, %v1800_v50 }
  0x21   : > { %v609_v5 = vld [vmem:[%s392_s28] sm:$0xff]  ;;  %v610_v10 = vld [vmem:[%s392_s28 + $0x8] sm:$0xff]  ;;  %899 = vmatprep.subr.mxu1 %v608_v8  ;;  %v1588_v18 = vld [vmem:[#allocation2 + $0x38] sm:$0xff]   ;;  %s1460_s28 = sshll.u32 %s1901_s24, 2 }
  0x22   : > { %1463 = vmatmul.mubr.msk.f32.vlgmr.msra.gmra.mxu0 %vm617_vm1, %v609_v5  ;;  %1467 = vmatmul.mubr.msk.f32.vlgmr.msra.gmra.mxu1 %vm617_vm1, %v609_v5  ;;  %v599_v14 = vld [vmem:[%s386_s26] sm:$0xff]  ;;  %v1589_v19 = vld [vmem:[#allocation2 + $0xb8] sm:$0xff]   ;;  %v600_v20 = vld [vmem:[%s386_s26 + $0x8] sm:$0xff]  ;;  %s398_s14 = scalar_lea.vmem %s1897_s10, %s1460_s28 }
  0x23   : > { %823 = vmatpush1.msra.mxu0 %v605_v7  ;;  %703 = vmatprep.mubr.f32.mxu0 %v1667_v0  ;;  %v1592_v23 = vld [vmem:[#allocation2 + $0x30] sm:$0xff]   ;;  %v1596_v27 = vld [vmem:[#allocation2 + $0x28] sm:$0xff]   ;;  %v1598_v29 = vld [vmem:[#allocation2 + $0x60] sm:$0xff]  }
  0x24   : > { %780 = vmatprep.mubr.f32.mxu1 %v1667_v0  ;;  %900 = vmatpush1.msra.mxu1 %v607_v9  ;;  %v1593_v24 = vld [vmem:[#allocation2 + $0xb0] sm:$0xff]   ;;  %v1597_v28 = vld [vmem:[#allocation2 + $0xa8] sm:$0xff]   ;;  %v1599_v30 = vld [vmem:[#allocation2 + $0xe0] sm:$0xff]  }
  0x25   : > { %824 = vmatprep.subr.mxu0 %v602_v11  ;;  %901 = vmatprep.subr.mxu1 %v604_v13  ;;  %v1600_v31 = vld [vmem:[#allocation2 + $0x20] sm:$0xff]   ;;  %v1602_v33 = vld [vmem:[#allocation2 + $0x58] sm:$0xff]   ;;  %v1606_v37 = vld [vmem:[#allocation2 + $0x50] sm:$0xff]  }
  0x26   : > { %1464 = vmatmul.mubr.msk.f32.gmra.mxu0 %vm617_vm1, %v610_v10  ;;  %1468 = vmatmul.mubr.msk.f32.gmra.mxu1 %vm617_vm1, %v610_v10  ;;  %v1601_v32 = vld [vmem:[#allocation2 + $0xa0] sm:$0xff]   ;;  %v1603_v34 = vld [vmem:[#allocation2 + $0xd8] sm:$0xff]   ;;  %v1607_v38 = vld [vmem:[#allocation2 + $0xd0] sm:$0xff]  }
  0x27   : > { %825 = vmatpush1.msra.mxu0 %v601_v12  ;;  %858 = vmatprep.mubr.f32.mxu0 %v1667_v0  ;;  %v1604_v35 = vld [vmem:[#allocation2 + $0x18] sm:$0xff]   ;;  %v1608_v39 = vld [vmem:[#allocation2 + $0x10] sm:$0xff]   ;;  %v1610_v41 = vld [vmem:[#allocation2 + $0x48] sm:$0xff]  }
  0x28   : > { %902 = vmatpush1.msra.mxu1 %v603_v15  ;;  %935 = vmatprep.mubr.f32.mxu1 %v1667_v0  ;;  %v1605_v36 = vld [vmem:[#allocation2 + $0x98] sm:$0xff]   ;;  %v1609_v40 = vld [vmem:[#allocation2 + $0x90] sm:$0xff]   ;;  %v1611_v42 = vld [vmem:[#allocation2 + $0xc8] sm:$0xff]  }
  0x29   : > { %1517 = vmatprep.subr.bf16.mxu0 %v1586_v16  ;;  %1539 = vmatprep.subr.bf16.mxu1 %v1587_v17  ;;  %v1612_v43 = vld [vmem:[#allocation2 + $0x8] sm:$0xff]   ;;  %v1614_v45 = vld [vmem:[#allocation2 + $0x40] sm:$0xff]  }
  0x2a   : > { %1469 = vmatmul.mubr.msk.f32.vlgmr.msra.gmra.mxu0 %vm787_vm2, %v599_v14  ;;  %1471 = vmatmul.mubr.msk.f32.vlgmr.msra.gmra.mxu1 %vm787_vm2, %v599_v14  ;;  %v1613_v44 = vld [vmem:[#allocation2 + $0x88] sm:$0xff]   ;;  %v1615_v46 = vld [vmem:[#allocation2 + $0xc0] sm:$0xff]  }
  0x2b   : > { %864 = vmatprep.mubr.f32.mxu0 %v1667_v0  ;;  %941 = vmatprep.mubr.f32.mxu1 %v1667_v0  ;;  %v1616_v47 = vld [vmem:[#allocation2] sm:$0xff]  }
  0x2c   : > { %1518 = vmatpush3.bf16.msra.mxu0 %v1588_v18  ;;  %1540 = vmatpush3.bf16.msra.mxu1 %v1589_v19  ;;  %v1617_v48 = vld [vmem:[#allocation2 + $0x80] sm:$0xff]  }
  0x2d   : > { %1519 = vmatprep.subr.bf16.mxu0 %v1590_v21  ;;  %1541 = vmatprep.subr.bf16.mxu1 %v1591_v22  ;;  %v401_v52 = vld [vmem:[%s1889_s2] sm:$0xf]  ;;  %v402_v53 = vld [vmem:[%s1889_s2 + $0x4] sm:$0xf] }
  0x2e   : > { %1470 = vmatmul.mubr.msk.f32.gmra.mxu0 %vm787_vm2, %v600_v20  ;;  %1472 = vmatmul.mubr.msk.f32.gmra.mxu1 %vm787_vm2, %v600_v20  ;;  %v408_v56 = vrot.slane %v401_v52, %v1803_v51  ;;  %v424_v58 = vrot.slane %v402_v53, %v1803_v51  ;;  %v412_v59 = vrot.slane %v401_v52, %v1812_v54  ;;  %v462_v61 = vld [vmem:[%s1890_s3] sm:$0xf]  ;;  %v463_v62 = vld [vmem:[%s1890_s3 + $0x4] sm:$0xf] }
  0x2f   : > { %v428_v60 = vrot.slane %v402_v53, %v1812_v54  ;;  %v416_v63 = vrot.slane %v401_v52, %v1815_v55  ;;  %v432_v0 = vrot.slane %v402_v53, %v1815_v55  ;;  %v420_v1 = vrot.slane %v401_v52, %v1819_v57 }
  0x30   : > { %1520 = vmatpush3.bf16.msra.mxu0 %v1592_v23  ;;  %1542 = vmatpush3.bf16.msra.mxu1 %v1593_v24  ;;  %v436_v2 = vrot.slane %v402_v53, %v1819_v57  ;;  %v446_v3 = vsel %vm445_vm3, %v408_v56, 0.0  ;;  %v447_v4 = vsel %vm445_vm3, %v424_v58, 0.0  ;;  %v469_v5 = vrot.slane %v462_v61, %v1803_v51 }
  0x31   : > { %1521 = vmatprep.subr.bf16.mxu0 %v1594_v25  ;;  %1543 = vmatprep.subr.bf16.mxu1 %v1595_v26  ;;  %v473_v6 = vrot.slane %v462_v61, %v1812_v54  ;;  %v485_v7 = vrot.slane %v463_v62, %v1803_v51  ;;  %v449_v8 = vsel %vm445_vm3, %v412_v59, 0.0  ;;  %v450_v9 = vsel %vm445_vm3, %v428_v60, 0.0  ;;  %v538_v60 = vld [vmem:[%s1893_s6] sm:$0xf] }
  0x32   : > { %v477_v10 = vrot.slane %v462_v61, %v1815_v55  ;;  %v489_v11 = vrot.slane %v463_v62, %v1812_v54  ;;  %v448_v12 = vadd.f32 %v447_v4, %v446_v3  ;;  %v452_v13 = vsel %vm445_vm3, %v416_v63, 0.0 }
  0x33   : > { %v453_v14 = vsel %vm445_vm3, %v432_v0, 0.0  ;;  %v493_v15 = vrot.slane %v463_v62, %v1815_v55  ;;  %v455_v16 = vsel %vm445_vm3, %v420_v1, 0.0  ;;  %v456_v17 = vsel %vm445_vm3, %v436_v2, 0.0 }
  0x34   : > { %1522 = vmatpush3.bf16.msra.mxu0 %v1596_v27  ;;  %1544 = vmatpush3.bf16.msra.mxu1 %v1597_v28  ;;  %v481_v18 = vrot.slane %v462_v61, %v1819_v57  ;;  %v497_v19 = vrot.slane %v463_v62, %v1819_v57  ;;  %v451_v20 = vadd.f32 %v450_v9, %v449_v8  ;;  %v506_v21 = vsel %vm445_vm3, %v469_v5, 0.0 }
  0x35   : > { %1523 = vmatprep.subr.bf16.mxu0 %v1598_v29  ;;  %1545 = vmatprep.subr.bf16.mxu1 %v1599_v30  ;;  %v507_v22 = vsel %vm445_vm3, %v485_v7, 0.0  ;;  %v454_v23 = vadd.f32 %v453_v14, %v452_v13  ;;  %v509_v24 = vsel %vm445_vm3, %v473_v6, 0.0  ;;  %v510_v25 = vsel %vm445_vm3, %v489_v11, 0.0 }
  0x36   : > { %v457_v26 = vadd.f32 %v456_v17, %v455_v16  ;;  %v512_v27 = vsel %vm445_vm3, %v477_v10, 0.0  ;;  %v513_v28 = vsel %vm445_vm3, %v493_v15, 0.0  ;;  %v458_v29 = vmul.f32 0.25, %v448_v12 }
  0x37   : > { %v508_v30 = vadd.f32 %v507_v22, %v506_v21  ;;  %v543_v63 = vrot.slane %v538_v60, %v1803_v51  ;;  %v547_v1 = vrot.slane %v538_v60, %v1812_v54  ;;  %v551_v2 = vrot.slane %v538_v60, %v1815_v55 }
  0x38   : > { %1524 = vmatpush3.bf16.msra.mxu0 %v1600_v31  ;;  %1546 = vmatpush3.bf16.msra.mxu1 %v1601_v32  ;;  %v515_v31 = vsel %vm445_vm3, %v481_v18, 0.0  ;;  %v516_v32 = vsel %vm445_vm3, %v497_v19, 0.0  ;;  %v555_v3 = vrot.slane %v538_v60, %v1819_v57  ;;  %v1668_v5 = vmov 1966171168  }
  0x39   : > { %1525 = vmatprep.subr.bf16.mxu0 %v1602_v33  ;;  %1547 = vmatprep.subr.bf16.mxu1 %v1603_v34  ;;  %v459_v33 = vmul.f32 0.25, %v451_v20  ;;  %v511_v34 = vadd.f32 %v510_v25, %v509_v24  ;;  %v576_v6 = vunpack.c.l.s4 %v1668_v5 }
  0x3b   : > { %v577_v11 = vunpack.c.0.s8 %v576_v6 }
  0x3c   : > { %1526 = vmatpush3.bf16.msra.mxu0 %v1604_v35  ;;  %1548 = vmatpush3.bf16.msra.mxu1 %v1605_v36  ;;  %v460_v35 = vmul.f32 0.25, %v454_v23  ;;  %v514_v36 = vadd.f32 %v513_v28, %v512_v27 }
  0x3d   : > { %1527 = vmatprep.subr.bf16.mxu0 %v1606_v37  ;;  %1549 = vmatprep.subr.bf16.mxu1 %v1607_v38  ;;  %v461_v37 = vmul.f32 0.25, %v457_v26  ;;  %v517_v38 = vadd.f32 %v516_v32, %v515_v31  ;;  %v580_v18 = vsub.s32 %v577_v11, %v1800_v50 }
  0x40   : > { %1528 = vmatpush3.bf16.msra.mxu0 %v1608_v39  ;;  %1550 = vmatpush3.bf16.msra.mxu1 %v1609_v40  ;;  %v518_v39 = vmul.f32 0.25, %v508_v30  ;;  %v522_v40 = vmul.f32 %v458_v29, %v458_v29 }
  0x41   : > { %1529 = vmatprep.subr.bf16.mxu0 %v1610_v41  ;;  %1551 = vmatprep.subr.bf16.mxu1 %v1611_v42  ;;  %v519_v41 = vmul.f32 0.25, %v511_v34  ;;  %v523_v42 = vmul.f32 %v459_v33, %v459_v33 }
  0x44   : > { %1530 = vmatpush3.bf16.msra.mxu0 %v1612_v43  ;;  %1552 = vmatpush3.bf16.msra.mxu1 %v1613_v44  ;;  %v520_v43 = vmul.f32 0.25, %v514_v36  ;;  %v524_v44 = vmul.f32 %v460_v35, %v460_v35 }
  0x45   : > { %1531 = vmatprep.subr.bf16.mxu0 %v1614_v45  ;;  %1553 = vmatprep.subr.bf16.mxu1 %v1615_v46  ;;  %v521_v45 = vmul.f32 0.25, %v517_v38  ;;  %v525_v46 = vmul.f32 %v461_v37, %v461_v37 }
  0x46   : > { %v528_v49 = vsub.f32 %v520_v43, %v524_v44 }
  0x47   : > { %v529_v52 = vsub.f32 %v521_v45, %v525_v46 }
  0x48   : > { %1532 = vmatpush3.bf16.msra.mxu0 %v1616_v47  ;;  %1554 = vmatpush3.bf16.msra.mxu1 %v1617_v48  ;;  %v526_v47 = vsub.f32 %v518_v39, %v522_v40  ;;  %v527_v48 = vsub.f32 %v519_v41, %v523_v42  ;;  %v532_v58 = vadd.f32 1e-05, %v528_v49 }
  0x49   : > { %v533_v59 = vadd.f32 1e-05, %v529_v52 }
  0x4a   : > { %v530_v53 = vadd.f32 1e-05, %v526_v47  ;;  %v531_v56 = vadd.f32 1e-05, %v527_v48 }
  0x4c   : > { %1618 = vrsqrt.f32 %v530_v53 }
  0x4d   : > { %1620 = vrsqrt.f32 %v531_v56 }
  0x4e   : > { %1622 = vrsqrt.f32 %v532_v58 }
  0x4f   : > { %1624 = vrsqrt.f32 %v533_v59 }
  0x59   : > { %v1619_v61 = vpop.eup %1618 }
  0x5a   : > { %v1621_v62 = vpop.eup %1620  ;;  %v560_v7 = vmul.f32 %v1619_v61, %v543_v63 }
  0x5b   : > { %v1623_v0 = vpop.eup %1622  ;;  %v561_v8 = vmul.f32 %v1621_v62, %v547_v1 }
  0x5c   : > { %v1625_v4 = vpop.eup %1624  ;;  %v562_v9 = vmul.f32 %v1623_v0, %v551_v2  ;;  %v565_v12 = vmul.f32 %v560_v7, %v458_v29  ;;  %v564_v29 = vld [vmem:[%s1894_s7] sm:$0xf]  ;;  %v951_v36 = vrot.slane %v560_v7, %v1803_v51 }
  0x5d   : > { %v563_v10 = vmul.f32 %v1625_v4, %v555_v3  ;;  %v566_v13 = vmul.f32 %v561_v8, %v459_v33  ;;  %v955_v50 = vrot.slane %v561_v8, %v1803_v51 }
  0x5e   : > { %v567_v14 = vmul.f32 %v562_v9, %v460_v35 }
  0x5f   : > { %v568_v15 = vmul.f32 %v563_v10, %v461_v37  ;;  %v573_v16 = vcombine.low %v565_v12, %v566_v13  ;;  %v963_v34 = vrot.slane %v563_v10, %v1803_v51  ;;  %v959_v37 = vrot.slane %v562_v9, %v1803_v51 }
  0x61   : > { %v574_v17 = vcombine.low %v567_v14, %v568_v15  ;;  %v581_v19 = vrot.slane %v573_v16, %v580_v18 }
  0x63   : > { %v588_v20 = vrot.slane %v574_v17, %v580_v18 }
  0x65   : > { %v589_v25 = vcombine.low %v581_v19, %v588_v20 }
  0x67   : > { %v596_v31 = vrot.slane %v589_v25, %v580_v18 }
  0x69   : > { %v598_v35 = vsub.f32 %v564_v29, %v596_v31 }
  0x6b   : > { %v980_v47 = vrot.slane %v598_v35, %v1812_v54  ;;  %v988_v49 = vrot.slane %v598_v35, %v1819_v57  ;;  %v976_v60 = vrot.slane %v598_v35, %v1803_v51  ;;  %v984_v62 = vrot.slane %v598_v35, %v1815_v55 }
  0xe2   : > { %v699_v21 = vpop.f32.mrf.mxu0  ;;  %v776_v22 = vpop.f32.mrf.mxu1 }
  0xe4   : > { %v701_v23 = vpop.f32.mrf.mxu0  ;;  %v778_v24 = vpop.f32.mrf.mxu1 }
  0xe6   : > { %v705_v26 = vpop.f32.mrf.mxu0  ;;  %v782_v27 = vpop.f32.mrf.mxu1 }
  0xe8   : > { %v707_v28 = vpop.f32.mrf.mxu0  ;;  %v784_v30 = vpop.f32.mrf.mxu1 }
  0xea   : > { %v860_v32 = vpop.f32.mrf.mxu0  ;;  %v937_v33 = vpop.f32.mrf.mxu1 }
  0xeb   : > { %v861_v40 = vadd.f32 %v860_v32, %v699_v21  ;;  %v938_v41 = vadd.f32 %v937_v33, %v776_v22 }
  0xec   : > { %v862_v38 = vpop.f32.mrf.mxu0  ;;  %v939_v39 = vpop.f32.mrf.mxu1 }
  0xed   : > { %v863_v42 = vadd.f32 %v862_v38, %v701_v23  ;;  %v940_v43 = vadd.f32 %v939_v39, %v778_v24  ;;  %v964_v59 = vmul.f32 %v951_v36, %v861_v40  ;;  %v966_v61 = vmul.f32 %v959_v37, %v938_v41 }
  0xee   : > { %v866_v44 = vpop.f32.mrf.mxu0  ;;  %v943_v45 = vpop.f32.mrf.mxu1 }
  0xef   : > { %v965_v46 = vmul.f32 %v955_v50, %v863_v42  ;;  %v967_v48 = vmul.f32 %v963_v34, %v940_v43  ;;  %v867_v52 = vadd.f32 %v866_v44, %v705_v26  ;;  %v944_v53 = vadd.f32 %v943_v45, %v782_v27  ;;  %v1473_v26 = vld [vmem:[%s1896_s9] ss:$0 sm:$0xff] }
  0xf0   : > { %v868_v56 = vpop.f32.mrf.mxu0  ;;  %v945_v58 = vpop.f32.mrf.mxu1  ;;  %v993_v7 = vadd.f32 %v976_v60, %v964_v59  ;;  %v995_v8 = vadd.f32 %v984_v62, %v966_v61 }
  0xf1   : > { %v968_v63 = vmul.f32 %v951_v36, %v867_v52  ;;  %v970_v0 = vmul.f32 %v959_v37, %v944_v53  ;;  %v869_v1 = vadd.f32 %v868_v56, %v707_v28  ;;  %v946_v2 = vadd.f32 %v945_v58, %v784_v30 }
  0xf2   : > { %v994_v3 = vadd.f32 %v980_v47, %v965_v46  ;;  %v996_v4 = vadd.f32 %v988_v49, %v967_v48  ;;  %v1001_v15 = vmax.f32 %v993_v7, 0.0  ;;  %v1003_v16 = vmax.f32 %v995_v8, 0.0 }
  0xf3   : > { %v997_v54 = vadd.f32 %v976_v60, %v968_v63  ;;  %v999_v5 = vadd.f32 %v984_v62, %v970_v0  ;;  %v969_v6 = vmul.f32 %v955_v50, %v869_v1  ;;  %v971_v57 = vmul.f32 %v963_v34, %v946_v2 }
  0xf4   : > { %v1002_v51 = vmax.f32 %v994_v3, 0.0  ;;  %v1004_v13 = vmax.f32 %v996_v4, 0.0 }
  0xf5   : > { %v998_v9 = vadd.f32 %v980_v47, %v969_v6  ;;  %v1000_v10 = vadd.f32 %v988_v49, %v971_v57  ;;  %v1005_v11 = vmax.f32 %v997_v54, 0.0  ;;  %v1007_v12 = vmax.f32 %v999_v5, 0.0 }
  0xf7   : > { %v1006_v14 = vmax.f32 %v998_v9, 0.0  ;;  %v1008_v55 = vmax.f32 %v1000_v10, 0.0  ;;  %v1009_v19 = vpack.c.bf16 %v1005_v11, %v1001_v15  ;;  %v1011_v20 = vpack.c.bf16 %v1007_v12, %v1003_v16 }
  0xf9   : > { %v1010_v17 = vpack.c.bf16 %v1006_v14, %v1002_v51  ;;  %v1012_v18 = vpack.c.bf16 %v1008_v55, %v1004_v13 }
  0xfb   : > { %1308 = vmatprep.mubr.bf16.mxu0 %v1010_v17  ;;  %1349 = vmatprep.mubr.bf16.mxu1 %v1012_v18 }
  0xfc   : > { %1309 = vmatmul.mubr.bf16.vlgmr.msra.gmra.mxu0 %v1009_v19  ;;  %1350 = vmatmul.mubr.bf16.vlgmr.msra.gmra.mxu1 %v1011_v20 }
 0x1bc   : > { %v1533_v21 = vpop.f32.mrf.mxu0  ;;  %v1555_v22 = vpop.f32.mrf.mxu1 }
 0x1be   : > { %v1534_v23 = vpop.f32.mrf.mxu0  ;;  %v1556_v24 = vpop.f32.mrf.mxu1 }
 0x1bf   : > { %v1535_v25 = vadd.f32 %v1534_v23, %v1533_v21  ;;  %v1557_v33 = vadd.f32 %v1556_v24, %v1555_v22 }
 0x1c0   : > { %v1536_v27 = vpop.f32.mrf.mxu0  ;;  %v1558_v28 = vpop.f32.mrf.mxu1 }
 0x1c1   : > { %v1311_v29 = vadd.f32 %v1535_v25, %v1473_v26 }
 0x1c2   : > { %v1537_v30 = vpop.f32.mrf.mxu0  ;;  %v1559_v31 = vpop.f32.mrf.mxu1 }
 0x1c3   : > { %v1538_v32 = vadd.f32 %v1537_v30, %v1536_v27  ;;  %v1560_v34 = vadd.f32 %v1559_v31, %v1558_v28  ;;  %v1352_v35 = vadd.f32 %v1557_v33, %v1311_v29 }
 0x1c5   : > { %v1314_v50 = vadd.f32 %v1538_v32, %v1473_v26 }
 0x1c7   : > { %v1355_v36 = vadd.f32 %v1560_v34, %v1314_v50 }
 0x1c9   : > { %v1515_v37 = vpack.c.bf16 %v1355_v36, %v1352_v35 }
 0x1cb   : > { %1516 = vst [vmem:[%s398_s14] sm:$0xff] %v1515_v37  }
 0x1cc PF: > { %s21_s13 = sadd.s32 1, %s1662_s13  }
 0x1cd   : > { %p18_p1 = scmp.ge.s32.totalorder %s21_s13, 4  }
 0x1cf   :  { %20 = sbr.rel (!%p18_p1) target bundleno = 1 (0x1), region = 98 }
 0x1d4   :  { %1390 = vsyncpa [#allocation3], 1 }
 0x1d5   :  { %1392 = vsyncpa [#allocation3 + $0x1], 1 }

</bundles_post_ra>
